<compile_context>
chip_gen: v7x
topology: tpu7x:2x2x1
jax: 0.10.0
libtpu: 0.0.40
codegen_flags: <defaults>
</compile_context>

<pallas_src>
import jax
import jax.numpy as jnp
from jax.experimental import pallas as pl
from jax.experimental.pallas import tpu as pltpu


# ---------------- config (small, consistent with the module) ----------------
LEN_LIDAR = 720
NUM_PATCH = 8
DIM_PATCH = LEN_LIDAR // NUM_PATCH   # 90
MODEL_DIM = 32
DROPOUT_P = 0.1                      # identity at inference (training=False)
BATCH = 2

# Row-block size for large batches: multiple of 8 (sublane) and of NUM_PATCH
# (keeps the tiled pos+bias addend phase-aligned).  ~512 rows per grid step
# amortizes the fixed per-step pipeline cost and approaches the HBM roofline.
# Also small enough (512*90*4B in + 512*32*4B out, double-buffered) to fit
# comfortably inside v7x's 64 MiB VMEM without raising vmem_limit_bytes.
_MAX_BLOCK_ROWS = 512


# ----------------------------- Pallas kernel --------------------------------
def _embedding_lidar_kernel(x_ref, w_ref, add_ref, o_ref):
    # x_ref:   (block_rows, DIM_PATCH)   flattened (batch, patch) rows
    # w_ref:   (DIM_PATCH, MODEL_DIM)    resident across all grid steps
    # add_ref: (block_rows, MODEL_DIM)   pos_embed + bias, pre-tiled per block
    # o_ref:   (block_rows, MODEL_DIM)
    y = jnp.dot(x_ref[...], w_ref[...], preferred_element_type=jnp.float32)
    o_ref[...] = (y + add_ref[...]).astype(o_ref.dtype)
    # TODO(synk): training-mode dropout would need pltpu.prng_seed /
    # pltpu.prng_random_bits per tile; eval mode (training=False) is identity.


def embedding_lidar_forward(inputs, weight, bias, pos_embed):
    """inputs: (B, 720) float32 -> (B, NUM_PATCH, MODEL_DIM) float32 (eval)."""
    batch = inputs.shape[0]
    rows = batch * NUM_PATCH
    x2d = inputs.reshape(rows, DIM_PATCH)          # (B*8, 90), same bytes

    # One block when everything fits (grid=(1,) for B=2); otherwise 512-row
    # "parallel" blocks so megacore chips (v7x) can shard across TensorCores.
    block_rows = rows if rows <= _MAX_BLOCK_ROWS else _MAX_BLOCK_ROWS
    num_blocks = pl.cdiv(rows, block_rows)
    padded_rows = num_blocks * block_rows
    if padded_rows != rows:
        x2d = jnp.pad(x2d, ((0, padded_rows - rows), (0, 0)))

    # Fold bias into pos_embed (one addend, no separate bias stream) and tile
    # it to a single row-block; it stays resident in VMEM across grid steps.
    addend = pos_embed + bias.reshape(1, MODEL_DIM)              # (8, 32)
    addend = jnp.tile(addend, (block_rows // NUM_PATCH, 1))      # (block_rows, 32)

    out = pl.pallas_call(
        _embedding_lidar_kernel,
        out_shape=jax.ShapeDtypeStruct((padded_rows, MODEL_DIM), jnp.float32),
        grid_spec=pltpu.PrefetchScalarGridSpec(
            num_scalar_prefetch=0,
            grid=(num_blocks,),
            in_specs=[
                pl.BlockSpec((block_rows, DIM_PATCH), lambda i: (i, 0)),
                pl.BlockSpec((DIM_PATCH, MODEL_DIM), lambda i: (0, 0)),
                pl.BlockSpec((block_rows, MODEL_DIM), lambda i: (0, 0)),
            ],
            out_specs=pl.BlockSpec((block_rows, MODEL_DIM), lambda i: (i, 0)),
        ),
        compiler_params=pltpu.CompilerParams(
            dimension_semantics=("parallel",)),
    )(x2d, weight, addend)

    # Free layout plumbing back to the module's output shape.
    return out[:rows].reshape(batch, NUM_PATCH, MODEL_DIM)


# ------------------------------- main ----------------------------------------
if __name__ == "__main__":
    key = jax.random.PRNGKey(0)
    k_in, k_w, k_b, k_pos = jax.random.split(key, 4)

    # Deterministic synthetic parameters (shapes from __init__):
    #   nn.Linear(dim_patch, model_dim): torch weight (model_dim, dim_patch)
    #   -> we store W.T as (dim_patch, model_dim); pos_embed: (num_patch, model_dim)
    bound = 1.0 / (DIM_PATCH ** 0.5)
    weight = jax.random.uniform(k_w, (DIM_PATCH, MODEL_DIM), jnp.float32,
                                minval=-bound, maxval=bound)
    bias = jax.random.uniform(k_b, (MODEL_DIM,), jnp.float32,
                              minval=-bound, maxval=bound)
    pos_embed = jax.random.normal(k_pos, (NUM_PATCH, MODEL_DIM), jnp.float32)

    inputs = jax.random.normal(k_in, (BATCH, LEN_LIDAR), jnp.float32)

    out = embedding_lidar_forward(inputs, weight, bias, pos_embed)
    out = jax.block_until_ready(out)

    # Pure-JAX reference check (eval-mode dropout == identity).
    ref = inputs.reshape(-1, NUM_PATCH, DIM_PATCH) @ weight + bias + pos_embed
    assert out.shape == (BATCH, NUM_PATCH, MODEL_DIM)
    assert jnp.allclose(out, ref, atol=1e-5, rtol=1e-5)

    print("KERNEL_OK")
</pallas_src>

<mosaic_0001>
module attributes {stable_mosaic.version = 11 : i64} {
  func.func @_embedding_lidar_kernel(%arg0: i32, %arg1: memref<16x90xf32, #tpu.memory_space<vmem>>, %arg2: memref<90x32xf32, #tpu.memory_space<vmem>>, %arg3: memref<16x32xf32, #tpu.memory_space<vmem>>, %arg4: memref<16x32xf32, #tpu.memory_space<vmem>>) attributes {dimension_semantics = [#tpu.dimension_semantics<parallel>], iteration_bounds = array<i64: 1>, scalar_prefetch = 0 : i64, scratch_operands = 0 : i64, tpu.core_type = #tpu.core_type<tc>, window_params = [{transform_indices = @transform_0, window_bounds = array<i64: 16, 90>}, {pipeline_mode = #tpu.pipeline_mode<synchronous>, transform_indices = @transform_1, window_bounds = array<i64: 90, 32>}, {pipeline_mode = #tpu.pipeline_mode<synchronous>, transform_indices = @transform_2, window_bounds = array<i64: 16, 32>}, {transform_indices = @transform_3, window_bounds = array<i64: 16, 32>}]} {
    %c0 = arith.constant 0 : index
    %c0_0 = arith.constant 0 : index
    %0 = vector.load %arg1[%c0, %c0_0] : memref<16x90xf32, #tpu.memory_space<vmem>>, vector<16x90xf32>
    %c0_1 = arith.constant 0 : index
    %c0_2 = arith.constant 0 : index
    %1 = vector.load %arg2[%c0_1, %c0_2] : memref<90x32xf32, #tpu.memory_space<vmem>>, vector<90x32xf32>
    %cst = arith.constant dense<0.000000e+00> : vector<16x32xf32>
    %2 = tpu.matmul %0, %1, %cst {dimension_numbers = #tpu.dot_dimension_numbers<[1], [0], [0], [1], [0, 0, 1, 1], [], []>} : vector<16x90xf32>, vector<90x32xf32>, vector<16x32xf32> -> vector<16x32xf32>
    %c0_3 = arith.constant 0 : index
    %c0_4 = arith.constant 0 : index
    %3 = vector.load %arg3[%c0_3, %c0_4] : memref<16x32xf32, #tpu.memory_space<vmem>>, vector<16x32xf32>
    %4 = arith.addf %2, %3 : vector<16x32xf32>
    %c0_5 = arith.constant 0 : index
    %c0_6 = arith.constant 0 : index
    %5 = vector.load %arg4[%c0_5, %c0_6] : memref<16x32xf32, #tpu.memory_space<vmem>>, vector<16x32xf32>
    tpu.vector_store %arg4[%c0_5, %c0_6], %4 {strides = array<i32>} : memref<16x32xf32, #tpu.memory_space<vmem>>, vector<16x32xf32>,
    return
  }
  func.func @transform_0(%arg0: i32) -> (i32, i32) {
    %c0_i32 = arith.constant 0 : i32
    %c0_i32_0 = arith.constant 0 : i32
    return %arg0, %c0_i32 : i32, i32
  }
  func.func @transform_1(%arg0: i32) -> (i32, i32) {
    %c0_i32 = arith.constant 0 : i32
    %c0_i32_0 = arith.constant 0 : i32
    %c0_i32_1 = arith.constant 0 : i32
    return %c0_i32, %c0_i32_0 : i32, i32
  }
  func.func @transform_2(%arg0: i32) -> (i32, i32) {
    %c0_i32 = arith.constant 0 : i32
    %c0_i32_0 = arith.constant 0 : i32
    %c0_i32_1 = arith.constant 0 : i32
    return %c0_i32, %c0_i32_0 : i32, i32
  }
  func.func @transform_3(%arg0: i32) -> (i32, i32) {
    %c0_i32 = arith.constant 0 : i32
    %c0_i32_0 = arith.constant 0 : i32
    return %arg0, %c0_i32 : i32, i32
  }
}

</mosaic_0001>

<bundles_post_ra>
// kernel: tpu_custom_call.1
= control target key start
LH: loop header
LB: loop body
LE: loop exit
PB: predicated region body
PF: predicated region fallthrough
CT: control target
= control target key end

     0   :  { %vm31_vm0 = vcmask 736256   ;;  %s320_s0 = inlined_call_operand.vmem [shape: f32[16,90], index: 0, kind: input, shape index: {}]   ;;  %s321_s1 = inlined_call_operand.vmem [shape: f32[90,32], index: 1, kind: input, shape index: {}]   ;;  %s322_s2 = inlined_call_operand.vmem [shape: f32[16,32], index: 2, kind: input, shape index: {}]   ;;  %s323_s3 = inlined_call_operand.hbm [shape: f32[16,32], index: 3, kind: output, shape index: {}]  }
   0x1   :  { %v17_v0 = vld [vmem:[%s321_s1] sm:$0xff]  ;;  %v18_v1 = vld [vmem:[%s321_s1 + $0x8] sm:$0xff]  ;;  %v19_v2 = vld [vmem:[%s321_s1 + $0x10] sm:$0xff] }
   0x2   :  { %v180_v3 = vpack.c.bf16 %v18_v1, %v17_v0  ;;  %v20_v4 = vld [vmem:[%s321_s1 + $0x18] sm:$0xff]  ;;  %v21_v6 = vld [vmem:[%s321_s1 + $0x20] sm:$0xff]  ;;  %v22_v7 = vld [vmem:[%s321_s1 + $0x28] sm:$0xff] }
   0x3   :  { %v184_v5 = vpack.c.bf16 %v20_v4, %v19_v2  ;;  %v15_v8 = vld [vmem:[%s320_s0] sm:$0xff]  ;;  %v188_v9 = vpack.c.bf16 %v22_v7, %v21_v6 }
   0x4   :  { %181 = vmatprep.subr.bf16.mxu0 %v180_v3  ;;  %177 = vmatprep.mubr.msk.f32.mxu0 %vm31_vm0, %v15_v8 }
   0x5   :  { %183 = vmatpush3.bf16.msra.mxu0 %v180_v3 }
   0x6   :  { %185 = vmatprep.subr.bf16.mxu0 %v184_v5 }
   0x7   :  { %8 = vsyncpa [#allocation3], 0  ;;  %v23_v10 = vld [vmem:[%s321_s1 + $0x30] sm:$0xff]  ;;  %v24_v11 = vld [vmem:[%s321_s1 + $0x38] sm:$0xff]  ;;  %vm38_vm1 = vcmask 1041408   ;;  %vm234_vm2 = vmmov 1  }
   0x8   :  { %v192_v12 = vpack.c.bf16 %v24_v11, %v23_v10  ;;  %v25_v13 = vld [vmem:[%s321_s1 + $0x40] sm:$0xff]  ;;  %v26_v14 = vld [vmem:[%s321_s1 + $0x48] sm:$0xff]  ;;  %v27_v16 = vld [vmem:[%s321_s1 + $0x50] sm:$0xff]  ;;  %vm117_vm4 = vcmask 261120  }
   0x9   :  { %187 = vmatpush3.bf16.msra.mxu0 %v184_v5  ;;  %v196_v15 = vpack.c.bf16 %v26_v14, %v25_v13  ;;  %v28_v17 = vld [vmem:[%s321_s1 + $0x58] sm:$0x3]  ;;  %vm201_vm3 = vmpackc.low %vm38_vm1, %vm234_vm2  ;;  %v16_v19 = vld [vmem:[%s320_s0 + $0x8] sm:$0xff]  ;;  %s235_s1 = smov [#allocation2]  }
   0xa   :  { %189 = vmatprep.subr.bf16.mxu0 %v188_v9  ;;  %v200_v18 = vpack.c.bf16 %v28_v17, %v27_v16  ;;  %v30_v20 = vld [vmem:[%s322_s2 + $0x8] sm:$0xff]  ;;  %s125_s15 = sshll.u32 %s235_s1, 4  ;;  %v29_v21 = vld [vmem:[%s322_s2] sm:$0xff]  ;;  %s126_s15 = int_to_ptr.vmem [resolvable:$true] %s125_s15 }
   0xb   :  { %s210_s0 = scalar_lea.vmem %s126_s15, 256  ;;  %p215_p1 = scmp.lt.s32.totalorder %s126_s15, %s126_s15 }
   0xc   :  { %p211_p0 = scmp.ne.s32.totalorder %s126_s15, %s210_s0  ;;  %p216_p2 = scmp.lt.s32.totalorder %s210_s0, %s210_s0 }
   0xd   :  { %191 = vmatpush3.bf16.msra.mxu0 %v188_v9 }
   0xe   :  { %193 = vmatprep.subr.bf16.mxu0 %v192_v12  ;;  %p217_p3 = por %p216_p2, %p215_p1 }
  0x10   :  { %p218_p4 = pnand %p217_p3, %p211_p0 }
  0x11   :  { %195 = vmatpush3.bf16.msra.mxu0 %v192_v12 }
  0x12   :  { %197 = vmatprep.subr.bf16.mxu0 %v196_v15 }
  0x15   :  { %199 = vmatpush3.bf16.msra.mxu0 %v196_v15 }
  0x16   :  { %202 = vmatprep.subr.msk.bf16.mxu0 %vm201_vm3, %v200_v18 }
  0x19   :  { %205 = vmatpush3.bf16.msk.msra.mxu0 %vm201_vm3, %v200_v18 }
  0x1c   :  { %178 = vmatmul.mubr.msk.f32.vlgmr.msra.gmra.mrb[0].mxu0 %vm31_vm0, %v16_v19 }
  0xef   :  { %v179_v22 = vpop.f32.mrb[0].mxu0 }
  0xf0   :  { %v114_v23 = vadd.f32 %v179_v22, %v30_v20  ;;  %v108_v24 = vpop.f32.mrb[1].mxu0 }
  0xf1   :  { %v109_v25 = vadd.f32 %v108_v24, %v29_v21 }
  0xf2   :  { %119 = vst.msk [vmem:[#allocation2 + $0x8] sm:$0xff] %vm117_vm4, %v114_v23 }
  0xf3   :  { %118 = vst.msk [vmem:[#allocation2] sm:$0xff] %vm117_vm4, %v109_v25 }
  0xf4   :  { %221 = shalt.err (!%p218_p4)
}
  0xf5   :  { %s222_s20 = scalar_lea.hbm %s323_s3, 256 }
  0xf6   :  { %p223_p5 = scmp.ne.s32.totalorder %s323_s3, %s222_s20  ;;  %p226_p6 = scmp.lt.u32.totalorder %s222_s20, %s323_s3 }
  0xf8   :  { %p228_p7 = pnand %p226_p6, %p223_p5 }
  0xfa   :  { %231 = shalt.err (!%p228_p7)
}
  0xfb   :  { %s236_s24 = smov 128   ;;  %s237_s25 = smov 8  }
  0xfc   :  { %131 = dma.vmem_to_hbm [thread:$0]  %s126_s15, 256, %s323_s3, [#allocation3], %s236_s24, %s236_s24, %s237_s25  }
  0xfd   :  { %232 = dma.done.wait [#allocation3], 256  }
  0xfe   :  { %233 = vsyncadd [#allocation3], 4294967040 }
  0xff   :  { %135 = vsyncpa [#allocation3], 1 }

</bundles_post_ra>
